<compile_context>
chip_gen: v7x
topology: tpu7x:2x2x1
jax: 0.10.0
libtpu: 0.0.40
codegen_flags: <defaults>
</compile_context>

<pallas_src>
import jax
import jax.numpy as jnp
from jax import lax
from jax.experimental import pallas as pl
from jax.experimental.pallas import tpu as pltpu


def _round_up(x, m):
    return (x + m - 1) // m * m


def _make_stats_kernel(n_total, n_cols, tn):
    """Builds the per-tile kernel with static sizes baked in.

    Per (batch-tile, reduction-tile) grid step it accumulates, per batch row:
        S  = sum(pred)            SX = sum(pred * row_idx)   SY = sum(pred * col_idx)
        L  = sum(label)           I  = sum(pred * label)
    into five VMEM-resident (TB, 1) f32 accumulators.
    """
    inv_c = 1.0 / float(n_cols)

    def kernel(p_ref, l_ref, s_ref, sx_ref, sy_ref, sl_ref, si_ref):
        # Zero the resident accumulators on the first step of the (innermost,
        # "arbitrary") reduction axis.
        @pl.when(pl.program_id(1) == 0)
        def _():
            s_ref[...] = jnp.zeros_like(s_ref)
            sx_ref[...] = jnp.zeros_like(sx_ref)
            sy_ref[...] = jnp.zeros_like(sy_ref)
            sl_ref[...] = jnp.zeros_like(sl_ref)
            si_ref[...] = jnp.zeros_like(si_ref)

        # Native-dtype loads; upcast to f32 only here (bf16 inputs therefore
        # move half the HBM bytes).
        pf = p_ref[...].astype(jnp.float32)          # (TB, TN)
        lf = l_ref[...].astype(jnp.float32)          # (TB, TN)

        # Global flattened index of every lane in this tile (row-major over the
        # original (R, C) image), built in-kernel -- no index/weight tensor is
        # streamed from HBM.
        n0 = pl.program_id(1) * tn
        idx = lax.broadcasted_iota(jnp.int32, (1, tn), 1) + n0

        # Mask the ragged tail of the flattened axis (also drops any garbage
        # read by a boundary block).
        valid = idx < n_total
        pf = jnp.where(valid, pf, 0.0)
        lf = jnp.where(valid, lf, 0.0)

        # row = idx // C, col = idx % C without a vector integer divide:
        # f32 estimate + exact +-1 integer correction (exact for any image with
        # fewer than 2**24 pixels, i.e. up to ~4096x4096).
        row = jnp.floor((idx.astype(jnp.float32) + 0.5) * inv_c).astype(jnp.int32)
        row = jnp.where(row * n_cols > idx, row - 1, row)
        row = jnp.where((row + 1) * n_cols <= idx, row + 1, row)
        col = idx - row * n_cols
        rowf = row.astype(jnp.float32)               # (1, TN), broadcast over TB
        colf = col.astype(jnp.float32)

        # Per-row reductions: vreg adds across lane groups (VPU) + one in-vreg
        # lane reduce (XLU) per stat -- all hidden under the input DMA.
        s_ref[...] += jnp.sum(pf, axis=-1, keepdims=True)
        sl_ref[...] += jnp.sum(lf, axis=-1, keepdims=True)
        si_ref[...] += jnp.sum(pf * lf, axis=-1, keepdims=True)
        sx_ref[...] += jnp.sum(pf * rowf, axis=-1, keepdims=True)
        sy_ref[...] += jnp.sum(pf * colf, axis=-1, keepdims=True)

    return kernel


def distance_plus_iou(pred, label, future_centroid):
    """Forward pass of the PyTorch DistancePlusIoU module.

    pred, label: (B, 1, R, C) (or (B, R, C)); future_centroid: (B, 2).
    """
    B = pred.shape[0]
    R, C = pred.shape[-2], pred.shape[-1]
    N = R * C

    # Lane-dense flattening (channel dim is 1); a pure metadata reshape, no copy.
    p2 = pred.reshape(B, N)
    l2 = label.reshape(B, N)

    # ---- tile selection ---------------------------------------------------
    # Batch tile: multiple of 8 (sublane), and >=2 tiles whenever B > 8 so the
    # "parallel" batch axis can shard across both TensorCores on v7x.
    if B <= 8:
        TB = B
    else:
        TB = min(128, max(8, _round_up((B + 1) // 2, 8)))

    # Reduction tile: ~1M elements of each input per grid step (4 MiB f32 /
    # 2 MiB bf16) to amortize the ~0.35 us/step pipeline overhead, while
    # staying well under v7x's 64 MiB VMEM with double-buffering + f32 temps.
    target_elems = 1024 * 1024
    cap = max(128, (target_elems // max(TB, 1)) // 128 * 128)
    TN = N if N <= cap else cap            # full axis in one block if it fits

    grid = (pl.cdiv(B, TB), pl.cdiv(N, TN))

    kernel = _make_stats_kernel(N, C, TN)
    stat_shape = jax.ShapeDtypeStruct((B, 1), jnp.float32)
    stat_spec = pl.BlockSpec((TB, 1), lambda b, n: (b, 0))   # resident over n
    in_spec = pl.BlockSpec((TB, TN), lambda b, n: (b, n))

    s, sx, sy, sl, si = pl.pallas_call(
        kernel,
        out_shape=(stat_shape,) * 5,
        grid_spec=pltpu.PrefetchScalarGridSpec(
            num_scalar_prefetch=0,
            grid=grid,
            in_specs=[in_spec, in_spec],
            out_specs=[stat_spec] * 5,
        ),
        compiler_params=pltpu.CompilerParams(
            dimension_semantics=("parallel", "arbitrary"),
            vmem_limit_bytes=48 * 1024 * 1024,   # v7x-safe, ample for v5e/v6e
        ),
    )(p2, l2)

    # ---- tiny scalar finalize in plain JAX on (B,)-sized vectors -----------
    S = s[:, 0]
    SX = sx[:, 0]
    SY = sy[:, 0]
    L = sl[:, 0]
    I = si[:, 0]

    # DistanceLoss
    total = jnp.sum(S)                                   # torch.sum(pred) over ALL batches
    mean_x = SX / total
    mean_y = SY / total
    mean_centroid = jnp.stack([mean_x, mean_y], axis=1)  # cat((mean_x, mean_y), 1)
    diff = future_centroid.astype(jnp.float32) - mean_centroid
    dist_loss = jnp.mean(jnp.sqrt(jnp.sum(diff * diff, axis=1)))

    # IoULoss
    union = S + L - I
    iou_loss = 1.0 - jnp.mean(I / union)

    # order = 1.0 if dist_loss <= 1 else 10**ceil(log10(dist_loss))
    # (the PyTorch .item() branch becomes a traced jnp.where; same value)
    order = jnp.where(dist_loss <= 1.0, 1.0,
                      jnp.power(10.0, jnp.ceil(jnp.log10(dist_loss))))
    return iou_loss + dist_loss / order


def distance_plus_iou_ref(pred, label, future_centroid):
    """Pure-JAX reference mirroring the PyTorch module exactly."""
    p4 = pred.astype(jnp.float32)
    l4 = label.astype(jnp.float32)

    inter = p4 * l4
    union = p4 + l4 - inter
    iou_loss = 1.0 - jnp.mean(
        jnp.sum(inter, axis=(-1, -2)) / jnp.sum(union, axis=(-1, -2)))

    p = jnp.squeeze(p4, axis=1)
    _, R, C = p.shape
    total = jnp.sum(p)
    y_idx = jnp.arange(C, dtype=jnp.float32)
    x_idx = jnp.arange(R, dtype=jnp.float32)
    mean_y = jnp.sum(p * y_idx[None, None, :], axis=(1, 2)) / total
    mean_x = jnp.sum(p * x_idx[None, :, None], axis=(1, 2)) / total
    mean_centroid = jnp.stack([mean_x, mean_y], axis=1)
    diff = future_centroid.astype(jnp.float32) - mean_centroid
    dist_loss = jnp.mean(jnp.linalg.norm(diff, ord=2, axis=1))

    order = jnp.where(dist_loss <= 1.0, 1.0,
                      jnp.power(10.0, jnp.ceil(jnp.log10(dist_loss))))
    return iou_loss + dist_loss / order


if __name__ == "__main__":
    key = jax.random.PRNGKey(0)
    k1, k2, k3 = jax.random.split(key, 3)

    B, R, C = 2, 16, 16
    pred = jax.random.uniform(k1, (B, 1, R, C), dtype=jnp.float32)
    label = (jax.random.uniform(k2, (B, 1, R, C)) > 0.5).astype(jnp.float32)
    future_centroid = jax.random.uniform(k3, (B, 2), dtype=jnp.float32) * R

    loss = distance_plus_iou(pred, label, future_centroid)
    jax.block_until_ready(loss)

    ref = distance_plus_iou_ref(pred, label, future_centroid)
    assert jnp.allclose(loss, ref, rtol=1e-5, atol=1e-5), (loss, ref)

    print("KERNEL_OK")
</pallas_src>

<mosaic_0001>
module attributes {stable_mosaic.version = 11 : i64} {
  func.func @kernel(%arg0: i32, %arg1: i32, %arg2: memref<2x256xf32, #tpu.memory_space<vmem>>, %arg3: memref<2x256xf32, #tpu.memory_space<vmem>>, %arg4: memref<2x1xf32, #tpu.memory_space<vmem>>, %arg5: memref<2x1xf32, #tpu.memory_space<vmem>>, %arg6: memref<2x1xf32, #tpu.memory_space<vmem>>, %arg7: memref<2x1xf32, #tpu.memory_space<vmem>>, %arg8: memref<2x1xf32, #tpu.memory_space<vmem>>) attributes {dimension_semantics = [#tpu.dimension_semantics<parallel>, #tpu.dimension_semantics<arbitrary>], iteration_bounds = array<i64: 1, 1>, scalar_prefetch = 0 : i64, scratch_operands = 0 : i64, tpu.core_type = #tpu.core_type<tc>, window_params = [{transform_indices = @transform_0, window_bounds = array<i64: 2, 256>}, {transform_indices = @transform_1, window_bounds = array<i64: 2, 256>}, {transform_indices = @transform_2, window_bounds = array<i64: 2, 1>}, {transform_indices = @transform_3, window_bounds = array<i64: 2, 1>}, {transform_indices = @transform_4, window_bounds = array<i64: 2, 1>}, {transform_indices = @transform_5, window_bounds = array<i64: 2, 1>}, {transform_indices = @transform_6, window_bounds = array<i64: 2, 1>}]} {
    %c0_i32 = arith.constant 0 : i32
    %0 = arith.cmpi eq, %arg1, %c0_i32 : i32
    %1 = arith.extui %0 : i1 to i32
    %c0_i32_0 = arith.constant 0 : i32
    %2 = arith.cmpi ne, %1, %c0_i32_0 : i32
    scf.if %2 {
      %cst_37 = arith.constant 0.000000e+00 : f32
      %75 = vector.broadcast %cst_37 : f32 to vector<2x1xf32>
      %c0_38 = arith.constant 0 : index
      %c0_39 = arith.constant 0 : index
      %76 = vector.load %arg4[%c0_38, %c0_39] : memref<2x1xf32, #tpu.memory_space<vmem>>, vector<2x1xf32>
      tpu.vector_store %arg4[%c0_38, %c0_39], %75 {strides = array<i32>} : memref<2x1xf32, #tpu.memory_space<vmem>>, vector<2x1xf32>,
      %cst_40 = arith.constant 0.000000e+00 : f32
      %77 = vector.broadcast %cst_40 : f32 to vector<2x1xf32>
      %c0_41 = arith.constant 0 : index
      %c0_42 = arith.constant 0 : index
      %78 = vector.load %arg5[%c0_41, %c0_42] : memref<2x1xf32, #tpu.memory_space<vmem>>, vector<2x1xf32>
      tpu.vector_store %arg5[%c0_41, %c0_42], %77 {strides = array<i32>} : memref<2x1xf32, #tpu.memory_space<vmem>>, vector<2x1xf32>,
      %cst_43 = arith.constant 0.000000e+00 : f32
      %79 = vector.broadcast %cst_43 : f32 to vector<2x1xf32>
      %c0_44 = arith.constant 0 : index
      %c0_45 = arith.constant 0 : index
      %80 = vector.load %arg6[%c0_44, %c0_45] : memref<2x1xf32, #tpu.memory_space<vmem>>, vector<2x1xf32>
      tpu.vector_store %arg6[%c0_44, %c0_45], %79 {strides = array<i32>} : memref<2x1xf32, #tpu.memory_space<vmem>>, vector<2x1xf32>,
      %cst_46 = arith.constant 0.000000e+00 : f32
      %81 = vector.broadcast %cst_46 : f32 to vector<2x1xf32>
      %c0_47 = arith.constant 0 : index
      %c0_48 = arith.constant 0 : index
      %82 = vector.load %arg7[%c0_47, %c0_48] : memref<2x1xf32, #tpu.memory_space<vmem>>, vector<2x1xf32>
      tpu.vector_store %arg7[%c0_47, %c0_48], %81 {strides = array<i32>} : memref<2x1xf32, #tpu.memory_space<vmem>>, vector<2x1xf32>,
      %cst_49 = arith.constant 0.000000e+00 : f32
      %83 = vector.broadcast %cst_49 : f32 to vector<2x1xf32>
      %c0_50 = arith.constant 0 : index
      %c0_51 = arith.constant 0 : index
      %84 = vector.load %arg8[%c0_50, %c0_51] : memref<2x1xf32, #tpu.memory_space<vmem>>, vector<2x1xf32>
      tpu.vector_store %arg8[%c0_50, %c0_51], %83 {strides = array<i32>} : memref<2x1xf32, #tpu.memory_space<vmem>>, vector<2x1xf32>,
    } else {
    }
    %c0 = arith.constant 0 : index
    %c0_1 = arith.constant 0 : index
    %3 = vector.load %arg2[%c0, %c0_1] : memref<2x256xf32, #tpu.memory_space<vmem>>, vector<2x256xf32>
    %c0_2 = arith.constant 0 : index
    %c0_3 = arith.constant 0 : index
    %4 = vector.load %arg3[%c0_2, %c0_3] : memref<2x256xf32, #tpu.memory_space<vmem>>, vector<2x256xf32>
    %c256_i32 = arith.constant 256 : i32
    %5 = arith.muli %arg1, %c256_i32 : i32
    %6 = tpu.iota {dimensions = array<i32: 1>} : vector<1x256xi32>
    %7 = vector.broadcast %5 : i32 to vector<1x256xi32>
    %8 = arith.addi %6, %7 : vector<1x256xi32>
    %c256_i32_4 = arith.constant 256 : i32
    %9 = vector.broadcast %c256_i32_4 : i32 to vector<1x256xi32>
    %10 = arith.cmpi slt, %8, %9 : vector<1x256xi32>
    %cst = arith.constant 0.000000e+00 : f32
    %11 = vector.shape_cast %10 : vector<1x256xi1> to vector<1x256xi1>
    %12 = vector.broadcast %11 : vector<1x256xi1> to vector<2x256xi1>
    %13 = vector.broadcast %cst : f32 to vector<2x256xf32>
    %14 = arith.select %12, %3, %13 : vector<2x256xi1>, vector<2x256xf32>
    %cst_5 = arith.constant 0.000000e+00 : f32
    %15 = vector.shape_cast %10 : vector<1x256xi1> to vector<1x256xi1>
    %16 = vector.broadcast %15 : vector<1x256xi1> to vector<2x256xi1>
    %17 = vector.broadcast %cst_5 : f32 to vector<2x256xf32>
    %18 = arith.select %16, %4, %17 : vector<2x256xi1>, vector<2x256xf32>
    %19 = arith.sitofp %8 : vector<1x256xi32> to vector<1x256xf32>
    %cst_6 = arith.constant 5.000000e-01 : f32
    %20 = vector.broadcast %cst_6 : f32 to vector<1x256xf32>
    %21 = arith.addf %19, %20 : vector<1x256xf32>
    %cst_7 = arith.constant 6.250000e-02 : f32
    %22 = vector.broadcast %cst_7 : f32 to vector<1x256xf32>
    %23 = arith.mulf %21, %22 : vector<1x256xf32>
    %24 = math.floor %23 : vector<1x256xf32>
    %25 = arith.fptosi %24 : vector<1x256xf32> to vector<1x256xi32>
    %c16_i32 = arith.constant 16 : i32
    %26 = vector.broadcast %c16_i32 : i32 to vector<1x256xi32>
    %27 = arith.muli %25, %26 : vector<1x256xi32>
    %28 = arith.cmpi sgt, %27, %8 : vector<1x256xi32>
    %c1_i32 = arith.constant 1 : i32
    %29 = vector.broadcast %c1_i32 : i32 to vector<1x256xi32>
    %30 = arith.subi %25, %29 : vector<1x256xi32>
    %31 = arith.select %28, %30, %25 : vector<1x256xi1>, vector<1x256xi32>
    %c1_i32_8 = arith.constant 1 : i32
    %32 = vector.broadcast %c1_i32_8 : i32 to vector<1x256xi32>
    %33 = arith.addi %31, %32 : vector<1x256xi32>
    %c16_i32_9 = arith.constant 16 : i32
    %34 = vector.broadcast %c16_i32_9 : i32 to vector<1x256xi32>
    %35 = arith.muli %33, %34 : vector<1x256xi32>
    %36 = arith.cmpi sle, %35, %8 : vector<1x256xi32>
    %c1_i32_10 = arith.constant 1 : i32
    %37 = vector.broadcast %c1_i32_10 : i32 to vector<1x256xi32>
    %38 = arith.addi %31, %37 : vector<1x256xi32>
    %39 = arith.select %36, %38, %31 : vector<1x256xi1>, vector<1x256xi32>
    %c16_i32_11 = arith.constant 16 : i32
    %40 = vector.broadcast %c16_i32_11 : i32 to vector<1x256xi32>
    %41 = arith.muli %39, %40 : vector<1x256xi32>
    %42 = arith.subi %8, %41 : vector<1x256xi32>
    %43 = arith.sitofp %39 : vector<1x256xi32> to vector<1x256xf32>
    %44 = arith.sitofp %42 : vector<1x256xi32> to vector<1x256xf32>
    %c0_12 = arith.constant 0 : index
    %c0_13 = arith.constant 0 : index
    %45 = vector.load %arg4[%c0_12, %c0_13] : memref<2x1xf32, #tpu.memory_space<vmem>>, vector<2x1xf32>
    %cst_14 = arith.constant dense<0.000000e+00> : vector<2xf32>
    %46 = vector.multi_reduction <add>, %14, %cst_14 [1] : vector<2x256xf32> to vector<2xf32>
    %47 = vector.shape_cast %46 : vector<2xf32> to vector<2x1xf32>
    %48 = arith.addf %45, %47 : vector<2x1xf32>
    %c0_15 = arith.constant 0 : index
    %c0_16 = arith.constant 0 : index
    %49 = vector.load %arg4[%c0_15, %c0_16] : memref<2x1xf32, #tpu.memory_space<vmem>>, vector<2x1xf32>
    tpu.vector_store %arg4[%c0_15, %c0_16], %48 {strides = array<i32>} : memref<2x1xf32, #tpu.memory_space<vmem>>, vector<2x1xf32>,
    %c0_17 = arith.constant 0 : index
    %c0_18 = arith.constant 0 : index
    %50 = vector.load %arg7[%c0_17, %c0_18] : memref<2x1xf32, #tpu.memory_space<vmem>>, vector<2x1xf32>
    %cst_19 = arith.constant dense<0.000000e+00> : vector<2xf32>
    %51 = vector.multi_reduction <add>, %18, %cst_19 [1] : vector<2x256xf32> to vector<2xf32>
    %52 = vector.shape_cast %51 : vector<2xf32> to vector<2x1xf32>
    %53 = arith.addf %50, %52 : vector<2x1xf32>
    %c0_20 = arith.constant 0 : index
    %c0_21 = arith.constant 0 : index
    %54 = vector.load %arg7[%c0_20, %c0_21] : memref<2x1xf32, #tpu.memory_space<vmem>>, vector<2x1xf32>
    tpu.vector_store %arg7[%c0_20, %c0_21], %53 {strides = array<i32>} : memref<2x1xf32, #tpu.memory_space<vmem>>, vector<2x1xf32>,
    %c0_22 = arith.constant 0 : index
    %c0_23 = arith.constant 0 : index
    %55 = vector.load %arg8[%c0_22, %c0_23] : memref<2x1xf32, #tpu.memory_space<vmem>>, vector<2x1xf32>
    %56 = arith.mulf %14, %18 : vector<2x256xf32>
    %cst_24 = arith.constant dense<0.000000e+00> : vector<2xf32>
    %57 = vector.multi_reduction <add>, %56, %cst_24 [1] : vector<2x256xf32> to vector<2xf32>
    %58 = vector.shape_cast %57 : vector<2xf32> to vector<2x1xf32>
    %59 = arith.addf %55, %58 : vector<2x1xf32>
    %c0_25 = arith.constant 0 : index
    %c0_26 = arith.constant 0 : index
    %60 = vector.load %arg8[%c0_25, %c0_26] : memref<2x1xf32, #tpu.memory_space<vmem>>, vector<2x1xf32>
    tpu.vector_store %arg8[%c0_25, %c0_26], %59 {strides = array<i32>} : memref<2x1xf32, #tpu.memory_space<vmem>>, vector<2x1xf32>,
    %c0_27 = arith.constant 0 : index
    %c0_28 = arith.constant 0 : index
    %61 = vector.load %arg5[%c0_27, %c0_28] : memref<2x1xf32, #tpu.memory_space<vmem>>, vector<2x1xf32>
    %62 = vector.broadcast %43 : vector<1x256xf32> to vector<2x256xf32>
    %63 = arith.mulf %14, %62 : vector<2x256xf32>
    %cst_29 = arith.constant dense<0.000000e+00> : vector<2xf32>
    %64 = vector.multi_reduction <add>, %63, %cst_29 [1] : vector<2x256xf32> to vector<2xf32>
    %65 = vector.shape_cast %64 : vector<2xf32> to vector<2x1xf32>
    %66 = arith.addf %61, %65 : vector<2x1xf32>
    %c0_30 = arith.constant 0 : index
    %c0_31 = arith.constant 0 : index
    %67 = vector.load %arg5[%c0_30, %c0_31] : memref<2x1xf32, #tpu.memory_space<vmem>>, vector<2x1xf32>
    tpu.vector_store %arg5[%c0_30, %c0_31], %66 {strides = array<i32>} : memref<2x1xf32, #tpu.memory_space<vmem>>, vector<2x1xf32>,
    %c0_32 = arith.constant 0 : index
    %c0_33 = arith.constant 0 : index
    %68 = vector.load %arg6[%c0_32, %c0_33] : memref<2x1xf32, #tpu.memory_space<vmem>>, vector<2x1xf32>
    %69 = vector.broadcast %44 : vector<1x256xf32> to vector<2x256xf32>
    %70 = arith.mulf %14, %69 : vector<2x256xf32>
    %cst_34 = arith.constant dense<0.000000e+00> : vector<2xf32>
    %71 = vector.multi_reduction <add>, %70, %cst_34 [1] : vector<2x256xf32> to vector<2xf32>
    %72 = vector.shape_cast %71 : vector<2xf32> to vector<2x1xf32>
    %73 = arith.addf %68, %72 : vector<2x1xf32>
    %c0_35 = arith.constant 0 : index
    %c0_36 = arith.constant 0 : index
    %74 = vector.load %arg6[%c0_35, %c0_36] : memref<2x1xf32, #tpu.memory_space<vmem>>, vector<2x1xf32>
    tpu.vector_store %arg6[%c0_35, %c0_36], %73 {strides = array<i32>} : memref<2x1xf32, #tpu.memory_space<vmem>>, vector<2x1xf32>,
    return
  }
  func.func @transform_0(%arg0: i32, %arg1: i32) -> (i32, i32) {
    %c0_i32 = arith.constant 0 : i32
    return %arg0, %arg1 : i32, i32
  }
  func.func @transform_1(%arg0: i32, %arg1: i32) -> (i32, i32) {
    %c0_i32 = arith.constant 0 : i32
    return %arg0, %arg1 : i32, i32
  }
  func.func @transform_2(%arg0: i32, %arg1: i32) -> (i32, i32) {
    %c0_i32 = arith.constant 0 : i32
    %c0_i32_0 = arith.constant 0 : i32
    return %arg0, %c0_i32 : i32, i32
  }
  func.func @transform_3(%arg0: i32, %arg1: i32) -> (i32, i32) {
    %c0_i32 = arith.constant 0 : i32
    %c0_i32_0 = arith.constant 0 : i32
    return %arg0, %c0_i32 : i32, i32
  }
  func.func @transform_4(%arg0: i32, %arg1: i32) -> (i32, i32) {
    %c0_i32 = arith.constant 0 : i32
    %c0_i32_0 = arith.constant 0 : i32
    return %arg0, %c0_i32 : i32, i32
  }
  func.func @transform_5(%arg0: i32, %arg1: i32) -> (i32, i32) {
    %c0_i32 = arith.constant 0 : i32
    %c0_i32_0 = arith.constant 0 : i32
    return %arg0, %c0_i32 : i32, i32
  }
  func.func @transform_6(%arg0: i32, %arg1: i32) -> (i32, i32) {
    %c0_i32 = arith.constant 0 : i32
    %c0_i32_0 = arith.constant 0 : i32
    return %arg0, %c0_i32 : i32, i32
  }
}

</mosaic_0001>

<bundles_post_ra>
// kernel: tpu_custom_call.1
= control target key start
LH: loop header
LB: loop body
LE: loop exit
PB: predicated region body
PF: predicated region fallthrough
CT: control target
= control target key end

     0   :  { %12 = vsyncpa [#allocation3], 0  ;;  %s381_s0 = inlined_call_operand.hbm [shape: f32[2,256], index: 0, kind: input, shape index: {}]   ;;  %s382_s1 = inlined_call_operand.hbm [shape: f32[2,256], index: 1, kind: input, shape index: {}]   ;;  %s383_s2 = inlined_call_operand.vmem [shape: f32[2,1], index: 2, kind: output, shape index: {0}]   ;;  %s384_s3 = inlined_call_operand.vmem [shape: f32[2,1], index: 3, kind: output, shape index: {1}]   ;;  %s385_s4 = inlined_call_operand.vmem [shape: f32[2,1], index: 4, kind: output, shape index: {2}]   ;;  %s386_s5 = inlined_call_operand.vmem [shape: f32[2,1], index: 5, kind: output, shape index: {3}]   ;;  %s387_s6 = inlined_call_operand.vmem [shape: f32[2,1], index: 6, kind: output, shape index: {4}]  }
   0x1   :  { %13 = vsyncpa [#allocation5], 0  ;;  %s254_s21 = smov [#allocation2]   ;;  %s255_s23 = smov [#allocation4]  }
   0x2   :  { %s20_s22 = sshll.u32 %s254_s21, 4  ;;  %s30_s24 = sshll.u32 %s255_s23, 4  ;;  %s21_s22 = int_to_ptr.vmem [resolvable:$true] %s20_s22  ;;  %s31_s24 = int_to_ptr.vmem [resolvable:$true] %s30_s24 }
   0x3   :  { %s206_s27 = scalar_lea.hbm %s381_s0, 64 }
   0x4   :  { %p207_p0 = scmp.ne.s32.totalorder %s381_s0, %s206_s27  ;;  %p210_p1 = scmp.lt.u32.totalorder %s206_s27, %s381_s0 }
   0x6   :  { %p212_p2 = pnand %p210_p1, %p207_p0 }
   0x8   :  { %215 = shalt.err (!%p212_p2)
}
   0x9   :  { %s216_s8 = scalar_lea.vmem %s21_s22, 64  ;;  %p221_p4 = scmp.lt.s32.totalorder %s21_s22, %s21_s22 }
   0xa   :  { %p217_p3 = scmp.ne.s32.totalorder %s21_s22, %s216_s8  ;;  %p222_p5 = scmp.lt.s32.totalorder %s216_s8, %s216_s8 }
   0xc   :  { %p223_p6 = por %p222_p5, %p221_p4 }
   0xe   :  { %p224_p7 = pnand %p223_p6, %p217_p3 }
  0x10   :  { %227 = shalt.err (!%p224_p7)
}
  0x11   :  { %23 = dma.hbm_to_vmem [thread:$0]  %s381_s0, 64, %s21_s22, [#allocation3]  }
  0x12   :  { %s228_s13 = scalar_lea.hbm %s382_s1, 64 }
  0x13   :  { %p229_p8 = scmp.ne.s32.totalorder %s382_s1, %s228_s13  ;;  %p232_p9 = scmp.lt.u32.totalorder %s228_s13, %s382_s1 }
  0x15   :  { %p234_p10 = pnand %p232_p9, %p229_p8 }
  0x17   :  { %237 = shalt.err (!%p234_p10)
}
  0x18   :  { %s238_s18 = scalar_lea.vmem %s31_s24, 64  ;;  %p243_p12 = scmp.lt.s32.totalorder %s31_s24, %s31_s24 }
  0x19   :  { %p239_p11 = scmp.ne.s32.totalorder %s31_s24, %s238_s18  ;;  %p244_p13 = scmp.lt.s32.totalorder %s238_s18, %s238_s18 }
  0x1b   :  { %p245_p0 = por %p244_p13, %p243_p12 }
  0x1d   :  { %p246_p1 = pnand %p245_p0, %p239_p11 }
  0x1f   :  { %249 = shalt.err (!%p246_p1)
}
  0x20   :  { %33 = dma.hbm_to_vmem [thread:$0]  %s382_s1, 64, %s31_s24, [#allocation5]  }
  0x21   :  { %250 = dma.done.wait [#allocation3], 64  }
  0x22   :  { %251 = vsyncadd [#allocation3], 4294967232 }
  0x23   :  { %252 = dma.done.wait [#allocation5], 64  }
  0x24   :  { %253 = vsyncadd [#allocation5], 4294967232  ;;  %v53_v0 = vlaneseq  ;;  %vm44_vm0 = vcmask 1024   ;;  %v256_v1 = vmov 0.0   ;;  %vm126_vm1 = vcmask 1041408  }
  0x25   :  { %45 = vst.msk [vmem:[%s383_s2] sm:$0x3] %vm44_vm0, %v256_v1  ;;  %46 = vst.msk [vmem:[%s384_s3] sm:$0x3] %vm44_vm0, %v256_v1 }
  0x26   :  { %47 = vst.msk [vmem:[%s385_s4] sm:$0x3] %vm44_vm0, %v256_v1  ;;  %48 = vst.msk [vmem:[%s386_s5] sm:$0x3] %vm44_vm0, %v256_v1  ;;  %v54_v2 = vand.u32 127, %v53_v0 }
  0x27   :  { %49 = vst.msk [vmem:[%s387_s6] sm:$0x3] %vm44_vm0, %v256_v1  ;;  %v195_v7 = vld.sshfl [vmem:[#allocation2] sm:$0x33 pattern:$0x76325410] }
  0x28   :  { %v55_v3 = vadd.s32 128, %v54_v2  ;;  %v91_v4 = vcvt.s32.f32 %v54_v2  ;;  %v73_v8 = vcombine.high %v195_v7, %v195_v7  ;;  %v127_v9 = vsel %vm126_vm1, %v195_v7, 0.0  ;;  %v196_v10 = vld.sshfl [vmem:[#allocation4] sm:$0x33 pattern:$0x76325410] }
  0x29   :  { %v86_v12 = vcombine.high %v196_v10, %v196_v10  ;;  %v144_v13 = vmul.f32 %v196_v10, %v195_v7  ;;  %v136_v16 = vsel %vm126_vm1, %v196_v10, 0.0 }
  0x2a   :  { %v92_v5 = vcvt.s32.f32 %v55_v3  ;;  %v93_v6 = vadd.f32 0.5, %v91_v4  ;;  %v128_v15 = vsel %vm126_vm1, %v73_v8, 0.0 }
  0x2b   :  { %v129_v18 = vadd.f32 %v128_v15, %v127_v9  ;;  %v145_v19 = vmul.f32 %v86_v12, %v73_v8  ;;  %v146_v20 = vsel %vm126_vm1, %v144_v13, 0.0  ;;  %v137_v21 = vsel %vm126_vm1, %v86_v12, 0.0 }
  0x2c   :  { %v94_v11 = vadd.f32 0.5, %v92_v5  ;;  %v95_v14 = vmul.f32 0.0625, %v93_v6  ;;  %v138_v25 = vadd.f32 %v137_v21, %v136_v16  ;;  %v125_v61 = vld [vmem:[%s383_s2] sm:$0x3] }
  0x2d   :  { %130 = vadd.xlane.f32.xlu0 %v129_v18  ;;  %v147_v24 = vsel %vm126_vm1, %v145_v19, 0.0  ;;  %v135_v1 = vld [vmem:[%s386_s5] sm:$0x3] }
  0x2e   :  { %v96_v17 = vmul.f32 0.0625, %v94_v11  ;;  %v97_v22 = vfloor.f32 %v95_v14  ;;  %v148_v26 = vadd.f32 %v147_v24, %v146_v20  ;;  %v143_v0 = vld [vmem:[%s387_s6] sm:$0x3] }
  0x2f   :  { %v153_v6 = vld [vmem:[%s384_s3] sm:$0x3] }
  0x30   :  { %v98_v23 = vfloor.f32 %v96_v17  ;;  %v199_v27 = vtrunc.f32 %v97_v22  ;;  %149 = vadd.xlane.f32.xlu1 %v148_v26  ;;  %v163_v9 = vld [vmem:[%s385_s4] sm:$0x3] }
  0x31   :  { %139 = vadd.xlane.f32.xlu0 %v138_v25 }
  0x32   :  { %v201_v28 = vtrunc.f32 %v98_v23  ;;  %v200_v29 = vcvt.f32.s32 %v199_v27 }
  0x34   :  { %v202_v30 = vcvt.f32.s32 %v201_v28  ;;  %v101_v31 = vmul.u32 16, %v200_v29  ;;  %v197_v33 = vadd.s32 4294967295, %v200_v29 }
  0x36   :  { %v102_v32 = vmul.u32 16, %v202_v30  ;;  %v198_v34 = vadd.s32 4294967295, %v202_v30  ;;  %vm103_vm2 = vcmp.gt.s32.totalorder %v101_v31, %v54_v2 }
  0x37   :  { %v107_v35 = vsel %vm103_vm2, %v197_v33, %v200_v29 }
  0x38   :  { %vm104_vm3 = vcmp.gt.s32.totalorder %v102_v32, %v55_v3  ;;  %v109_v37 = vadd.s32 1, %v107_v35 }
  0x39   :  { %v108_v36 = vsel %vm104_vm3, %v198_v34, %v202_v30 }
  0x3a   :  { %v110_v38 = vadd.s32 1, %v108_v36  ;;  %v111_v39 = vmul.u32 16, %v109_v37 }
  0x3c   :  { %v112_v40 = vmul.u32 16, %v110_v38  ;;  %vm113_vm4 = vcmp.le.s32.totalorder %v111_v39, %v54_v2 }
  0x3d   :  { %v115_v41 = vsel %vm113_vm4, %v109_v37, %v107_v35 }
  0x3e   :  { %vm114_vm5 = vcmp.le.s32.totalorder %v112_v40, %v55_v3  ;;  %v117_v43 = vmul.u32 16, %v115_v41  ;;  %v121_v45 = vcvt.s32.f32 %v115_v41 }
  0x3f   :  { %v116_v42 = vsel %vm114_vm5, %v110_v38, %v108_v36 }
  0x40   :  { %v118_v44 = vmul.u32 16, %v116_v42  ;;  %v122_v46 = vcvt.s32.f32 %v116_v42  ;;  %v154_v47 = vmul.f32 %v195_v7, %v121_v45  ;;  %v119_v49 = vsub.s32 %v54_v2, %v117_v43 }
  0x42   :  { %v155_v48 = vmul.f32 %v122_v46, %v73_v8  ;;  %v120_v50 = vsub.s32 %v55_v3, %v118_v44  ;;  %v156_v51 = vsel %vm126_vm1, %v154_v47, 0.0  ;;  %v123_v53 = vcvt.s32.f32 %v119_v49 }
  0x44   :  { %v157_v52 = vsel %vm126_vm1, %v155_v48, 0.0  ;;  %v124_v54 = vcvt.s32.f32 %v120_v50  ;;  %v164_v56 = vmul.f32 %v195_v7, %v123_v53 }
  0x45   :  { %v158_v55 = vadd.f32 %v157_v52, %v156_v51 }
  0x46   :  { %v165_v57 = vmul.f32 %v124_v54, %v73_v8  ;;  %v166_v58 = vsel %vm126_vm1, %v164_v56, 0.0 }
  0x47   :  { %159 = vadd.xlane.f32.xlu1 %v158_v55 }
  0x48   :  { %v167_v59 = vsel %vm126_vm1, %v165_v57, 0.0 }
  0x49   :  { %v168_v60 = vadd.f32 %v167_v59, %v166_v58 }
  0x4b   :  { %169 = vadd.xlane.f32.xlu0 %v168_v60 }
  0xba   :  { %v131_v62 = vpop.xlane.xlu0 %130 }
  0xbb   :  { %v132_v63 = vadd.f32 %v131_v62, %v125_v61 }
  0xbd   :  { %134 = vst.msk [vmem:[%s383_s2] sm:$0x3] %vm44_vm0, %v132_v63  ;;  %v150_v2 = vpop.xlane.xlu1 %149 }
  0xbe   :  { %v151_v3 = vadd.f32 %v150_v2, %v143_v0  ;;  %v140_v4 = vpop.xlane.xlu0 %139 }
  0xbf   :  { %v141_v5 = vadd.f32 %v140_v4, %v135_v1 }
  0xc0   :  { %152 = vst.msk [vmem:[%s387_s6] sm:$0x3] %vm44_vm0, %v151_v3 }
  0xc1   :  { %142 = vst.msk [vmem:[%s386_s5] sm:$0x3] %vm44_vm0, %v141_v5 }
  0xd4   :  { %v160_v7 = vpop.xlane.xlu1 %159 }
  0xd5   :  { %v161_v8 = vadd.f32 %v160_v7, %v153_v6 }
  0xd7   :  { %162 = vst.msk [vmem:[%s384_s3] sm:$0x3] %vm44_vm0, %v161_v8 }
  0xd8   :  { %v170_v10 = vpop.xlane.xlu0 %169 }
  0xd9   :  { %v171_v11 = vadd.f32 %v170_v10, %v163_v9 }
  0xdb   :  { %172 = vst.msk [vmem:[%s385_s4] sm:$0x3] %vm44_vm0, %v171_v11 }
  0xdc   :  { %193 = vsyncpa [#allocation3], 1 }
  0xdd   :  { %194 = vsyncpa [#allocation5], 1 }

</bundles_post_ra>
